<compile_context>
chip_gen: v7x
topology: tpu7x:2x2x1
jax: 0.10.0
libtpu: 0.0.40
codegen_flags: <defaults>
</compile_context>

<pallas_src>
import functools
import math

import jax
import jax.numpy as jnp
from jax.experimental import pallas as pl
from jax.experimental.pallas import tpu as pltpu

_EPS = 1e-12          # torch.nn.functional.normalize default eps
_LANE = 128
_MXU = 256            # v6e/v7x MXU width
_SUBLANE = 8
_MAX_TILE_B = 512


def _round_up(n: int, m: int) -> int:
    return (n + m - 1) // m * m


def _vmem_budget_bytes() -> int:
    """Planning budget from physical VMEM (~96 MiB v5e/v6e, ~48 MiB v7x)."""
    try:
        cap = pltpu.get_tpu_info().vmem_capacity_bytes
    except Exception:
        cap = 64 * 1024 * 1024          # conservative (v7x-sized) fallback
    return min(cap * 3 // 4, 110 * 1024 * 1024)


def _single_buffered(block_shape, index_map):
    """Constant-index block: fetched once, so one VMEM buffer is enough."""
    try:
        return pl.BlockSpec(block_shape, index_map,
                            pipeline_mode=pl.Buffered(1))
    except (AttributeError, TypeError):
        return pl.BlockSpec(block_shape, index_map)


def _plan(B, IN, OUT, cb, sub, budget):
    """Pick tiling. Returns dict(tb, b_p, tk, in_p, out_p, resident)."""
    out_p = _round_up(OUT, _LANE)
    acc = 4                                     # f32 bias / acc / output

    # --- batch tiling: balanced tiles <= 512; >=2 tiles for moderate batches
    # so both v7x TensorCores get work under dimension_semantics=parallel. ---
    n_b = max(1, math.ceil(B / _MAX_TILE_B))
    if n_b == 1 and B >= 64:
        n_b = 2
    tb = _round_up(math.ceil(B / n_b), sub)

    def resident_bytes(tb_, in_):
        return (2 * tb_ * in_ * cb              # x tile (double-buffered)
                + in_ * out_p * cb              # weight (single-buffered)
                + 2 * tb_ * out_p * acc         # output tile (double-buffered)
                + out_p * acc)                  # bias

    def ktiled_bytes(tb_, tk_):
        return (2 * tb_ * tk_ * cb              # x slice
                + 2 * tk_ * out_p * cb          # weight slice (double-buffered)
                + 2 * tb_ * out_p * acc         # output (doubles as f32 acc)
                + out_p * acc)

    # --- Path 1: whole weight resident in VMEM, batch-only grid. Prefer a
    # 256-aligned K (v6e/v7x MXU); shrink the batch tile (down to 64) before
    # giving up on residency. ---
    floor = min(tb, max(sub, 64))
    tb_r = tb
    while True:
        for k_align in (_MXU, _LANE):
            in_p = _round_up(IN, k_align)
            if resident_bytes(tb_r, in_p) <= budget:
                nb = math.ceil(B / tb_r)
                return dict(tb=tb_r, b_p=nb * tb_r, tk=in_p, in_p=in_p,
                            out_p=out_p, resident=True)
        if tb_r <= floor:
            break
        tb_r = max(floor, _round_up(tb_r // 2, sub))

    # --- Path 2: K-streamed weight (needed when the weight exceeds VMEM,
    # e.g. on v7x's 64 MiB per TensorCore). ---
    in_p_min = _round_up(IN, _MXU)
    tk, in_p = _MXU, in_p_min
    for cand in (4096, 2048, 1024, 512):
        if cand >= in_p_min:
            continue
        padded = _round_up(IN, cand)
        if padded * 4 > in_p_min * 5:           # >25% zero-padding waste
            continue
        if ktiled_bytes(tb, cand) <= budget:
            tk, in_p = cand, padded
            break
    if tk == _MXU:
        while tb > sub and ktiled_bytes(tb, tk) > budget:
            tb = max(sub, _round_up(tb // 2, sub))
        in_p = in_p_min
    nb = math.ceil(B / tb)
    return dict(tb=tb, b_p=nb * tb, tk=tk, in_p=in_p, out_p=out_p,
                resident=False)


# ----------------------------- kernels --------------------------------------

def _resident_kernel(x_ref, w_ref, b_ref, o_ref):
    # Linear (MXU, f32 accumulate) + bias.
    y = jnp.dot(x_ref[...], w_ref[...],
                preferred_element_type=jnp.float32) + b_ref[...]
    # F.normalize(p=2, dim=1, eps=1e-12). Padded output columns are exactly 0,
    # so the norm over the padded width is exact. One sqrt + one divide per
    # ROW (EUP), then cheap VPU broadcast-multiplies.
    sq = jnp.sum(y * y, axis=-1, keepdims=True)
    inv = 1.0 / jnp.maximum(jnp.sqrt(sq), _EPS)          # (tb, 1)
    o_ref[...] = (y * inv).astype(o_ref.dtype)


def _ktiled_kernel(x_ref, w_ref, b_ref, o_ref):
    # Output block index is constant along k, so o_ref stays resident in VMEM
    # and serves as the f32 accumulator (P3 init/finalize pattern).
    k = pl.program_id(1)

    @pl.when(k == 0)
    def _():
        o_ref[...] = jnp.zeros_like(o_ref)

    o_ref[...] += jnp.dot(x_ref[...], w_ref[...],
                          preferred_element_type=jnp.float32)

    @pl.when(k == pl.num_programs(1) - 1)
    def _():
        y = o_ref[...] + b_ref[...]
        sq = jnp.sum(y * y, axis=-1, keepdims=True)
        inv = 1.0 / jnp.maximum(jnp.sqrt(sq), _EPS)
        o_ref[...] = (y * inv).astype(o_ref.dtype)


# ----------------------------- wrapper ---------------------------------------

@functools.partial(jax.jit, static_argnames=("compute_dtype", "max_vmem_bytes"))
def linear_embedder_forward(x, w, b, *, compute_dtype=jnp.float32,
                            max_vmem_bytes=None):
    """Fused Linear -> row-wise L2 normalize.

    x: [B, in_features]
    w: [in_features, out_features]  (PyTorch weight already transposed)
    b: [out_features]
    compute_dtype: jnp.float32 (bit-matches the reference) or jnp.bfloat16
        (MXU-native inputs, f32 accumulation, ~2-3x faster, looser numerics).
    max_vmem_bytes: override the VMEM planning budget (mostly for tests).
    """
    B, IN = x.shape
    OUT = w.shape[1]
    cb = jnp.finfo(compute_dtype).bits // 8
    sub = _SUBLANE if cb >= 4 else 2 * _SUBLANE          # bf16 packs 16 sublanes

    budget = max_vmem_bytes if max_vmem_bytes is not None else _vmem_budget_bytes()
    p = _plan(B, IN, OUT, cb, sub, budget)
    tb, b_p, tk, in_p, out_p = p["tb"], p["b_p"], p["tk"], p["in_p"], p["out_p"]

    # Pad / cast only when needed (static weights can be pre-padded + pre-cast
    # once by the caller and then pass straight through with no extra copy).
    if x.shape == (b_p, in_p) and x.dtype == compute_dtype:
        x_p = x
    else:
        x_p = jnp.zeros((b_p, in_p), compute_dtype).at[:B, :IN].set(
            x.astype(compute_dtype))
    if w.shape == (in_p, out_p) and w.dtype == compute_dtype:
        w_p = w
    else:
        w_p = jnp.zeros((in_p, out_p), compute_dtype).at[:IN, :OUT].set(
            w.astype(compute_dtype))
    if b.ndim == 2 and b.shape == (1, out_p) and b.dtype == jnp.float32:
        bias_p = b
    else:
        bias_p = jnp.zeros((1, out_p), jnp.float32).at[0, :OUT].set(
            b.reshape(-1).astype(jnp.float32))

    vmem_limit = min(max(budget, 32 * 1024 * 1024), 110 * 1024 * 1024)
    nb = b_p // tb

    if p["resident"]:
        cost = pl.CostEstimate(
            flops=2 * b_p * in_p * out_p + 4 * b_p * out_p,
            transcendentals=2 * b_p,
            bytes_accessed=cb * (b_p * in_p + in_p * out_p)
            + 4 * (out_p + b_p * out_p))
        out = pl.pallas_call(
            _resident_kernel,
            out_shape=jax.ShapeDtypeStruct((b_p, out_p), jnp.float32),
            grid=(nb,),
            in_specs=[
                # streaming activation tile (double-buffered by the pipeline)
                pl.BlockSpec((tb, in_p), lambda i: (i, 0)),
                # weight & bias fetched once, single VMEM copy
                _single_buffered((in_p, out_p), lambda i: (0, 0)),
                _single_buffered((1, out_p), lambda i: (0, 0)),
            ],
            out_specs=pl.BlockSpec((tb, out_p), lambda i: (i, 0)),
            compiler_params=pltpu.CompilerParams(
                dimension_semantics=("parallel",),
                vmem_limit_bytes=vmem_limit),
            cost_estimate=cost,
        )(x_p, w_p, bias_p)
    else:
        nk = in_p // tk
        cost = pl.CostEstimate(
            flops=2 * b_p * in_p * out_p + 4 * b_p * out_p,
            transcendentals=2 * b_p,
            bytes_accessed=cb * (b_p * in_p + nb * in_p * out_p)
            + 4 * (out_p + b_p * out_p))
        out = pl.pallas_call(
            _ktiled_kernel,
            out_shape=jax.ShapeDtypeStruct((b_p, out_p), jnp.float32),
            grid=(nb, nk),
            in_specs=[
                pl.BlockSpec((tb, tk), lambda i, k: (i, k)),
                pl.BlockSpec((tk, out_p), lambda i, k: (k, 0)),
                _single_buffered((1, out_p), lambda i, k: (0, 0)),
            ],
            out_specs=pl.BlockSpec((tb, out_p), lambda i, k: (i, 0)),
            compiler_params=pltpu.CompilerParams(
                dimension_semantics=("parallel", "arbitrary"),
                vmem_limit_bytes=vmem_limit),
            cost_estimate=cost,
        )(x_p, w_p, bias_p)

    if (b_p, out_p) == (B, OUT):
        return out
    return out[:B, :OUT]


def init_params(key, in_features, out_features):
    """PyTorch nn.Linear default init (uniform +-1/sqrt(fan_in)).

    Weight returned already transposed to [in, out] for the kernel.
    """
    kw, kb = jax.random.split(key)
    bound = 1.0 / math.sqrt(in_features)
    w = jax.random.uniform(kw, (in_features, out_features), jnp.float32,
                           -bound, bound)
    b = jax.random.uniform(kb, (out_features,), jnp.float32, -bound, bound)
    return w, b


if __name__ == "__main__":
    key = jax.random.PRNGKey(0)
    kx, kp, kx2, kp2 = jax.random.split(key, 4)

    def reference(x, w, b):
        y = jnp.dot(x, w, precision=jax.lax.Precision.HIGHEST) + b
        n = jnp.sqrt(jnp.sum(y * y, axis=1, keepdims=True))
        return y / jnp.maximum(n, _EPS)

    # --- case 1: small unaligned shapes, f32 path (resident weight) ---------
    B, IN, OUT = 8, 32, 24
    x = jax.random.normal(kx, (B, IN), dtype=jnp.float32)
    w, b = init_params(kp, IN, OUT)
    out = jax.block_until_ready(linear_embedder_forward(x, w, b))
    ref = reference(x, w, b)
    assert out.shape == (B, OUT)
    assert jnp.allclose(out, ref, atol=1e-5, rtol=1e-5), (
        float(jnp.max(jnp.abs(out - ref))))
    assert jnp.allclose(jnp.linalg.norm(out, axis=1), 1.0, atol=1e-5)

    # --- case 2: bf16 MXU inputs (f32 accumulate), looser tolerance ---------
    out_bf = jax.block_until_ready(
        linear_embedder_forward(x, w, b, compute_dtype=jnp.bfloat16))
    assert out_bf.shape == (B, OUT)
    assert jnp.allclose(out_bf, ref, atol=2e-2), (
        float(jnp.max(jnp.abs(out_bf - ref))))

    # --- case 3: force the K-streaming fallback (weight > VMEM budget) ------
    B2, IN2, OUT2 = 20, 1000, 250
    x2 = jax.random.normal(kx2, (B2, IN2), dtype=jnp.float32)
    w2, b2 = init_params(kp2, IN2, OUT2)
    out2 = jax.block_until_ready(
        linear_embedder_forward(x2, w2, b2, max_vmem_bytes=800_000))
    ref2 = reference(x2, w2, b2)
    assert out2.shape == (B2, OUT2)
    assert jnp.allclose(out2, ref2, atol=1e-4, rtol=1e-4), (
        float(jnp.max(jnp.abs(out2 - ref2))))
    assert jnp.allclose(jnp.linalg.norm(out2, axis=1), 1.0, atol=1e-4)

    print("KERNEL_OK")
</pallas_src>

<mosaic_0001>
module attributes {stable_mosaic.version = 11 : i64} {
  func.func @_resident_kernel(%arg0: i32, %arg1: memref<8x256xf32, #tpu.memory_space<vmem>>, %arg2: memref<256x128xf32, #tpu.memory_space<vmem>>, %arg3: memref<1x128xf32, #tpu.memory_space<vmem>>, %arg4: memref<8x128xf32, #tpu.memory_space<vmem>>) attributes {dimension_semantics = [#tpu.dimension_semantics<parallel>], iteration_bounds = array<i64: 1>, scalar_prefetch = 0 : i64, scratch_operands = 0 : i64, tpu.core_type = #tpu.core_type<tc>, window_params = [{transform_indices = @transform_0, window_bounds = array<i64: 8, 256>}, {pipeline_mode = #tpu.pipeline_mode<synchronous>, transform_indices = @transform_1, window_bounds = array<i64: 256, 128>}, {pipeline_mode = #tpu.pipeline_mode<synchronous>, transform_indices = @transform_2, window_bounds = array<i64: 1, 128>}, {transform_indices = @transform_3, window_bounds = array<i64: 8, 128>}]} {
    %c0 = arith.constant 0 : index
    %c0_0 = arith.constant 0 : index
    %0 = vector.load %arg1[%c0, %c0_0] : memref<8x256xf32, #tpu.memory_space<vmem>>, vector<8x256xf32>
    %c0_1 = arith.constant 0 : index
    %c0_2 = arith.constant 0 : index
    %1 = vector.load %arg2[%c0_1, %c0_2] : memref<256x128xf32, #tpu.memory_space<vmem>>, vector<256x128xf32>
    %cst = arith.constant dense<0.000000e+00> : vector<8x128xf32>
    %2 = tpu.matmul %0, %1, %cst {dimension_numbers = #tpu.dot_dimension_numbers<[1], [0], [0], [1], [0, 0, 1, 1], [], []>} : vector<8x256xf32>, vector<256x128xf32>, vector<8x128xf32> -> vector<8x128xf32>
    %c0_3 = arith.constant 0 : index
    %c0_4 = arith.constant 0 : index
    %3 = vector.load %arg3[%c0_3, %c0_4] : memref<1x128xf32, #tpu.memory_space<vmem>>, vector<1x128xf32>
    %4 = vector.broadcast %3 : vector<1x128xf32> to vector<8x128xf32>
    %5 = arith.addf %2, %4 : vector<8x128xf32>
    %6 = arith.mulf %5, %5 : vector<8x128xf32>
    %cst_5 = arith.constant dense<0.000000e+00> : vector<8xf32>
    %7 = vector.multi_reduction <add>, %6, %cst_5 [1] : vector<8x128xf32> to vector<8xf32>
    %8 = vector.shape_cast %7 : vector<8xf32> to vector<8x1xf32>
    %9 = math.sqrt %8 : vector<8x1xf32>
    %cst_6 = arith.constant 9.99999996E-13 : f32
    %10 = vector.broadcast %cst_6 : f32 to vector<8x1xf32>
    %11 = arith.maximumf %9, %10 : vector<8x1xf32>
    %cst_7 = arith.constant 1.000000e+00 : f32
    %12 = vector.broadcast %cst_7 : f32 to vector<8x1xf32>
    %13 = arith.divf %12, %11 : vector<8x1xf32>
    %14 = vector.broadcast %13 : vector<8x1xf32> to vector<8x128xf32>
    %15 = arith.mulf %5, %14 : vector<8x128xf32>
    %c0_8 = arith.constant 0 : index
    %c0_9 = arith.constant 0 : index
    %16 = vector.load %arg4[%c0_8, %c0_9] : memref<8x128xf32, #tpu.memory_space<vmem>>, vector<8x128xf32>
    tpu.vector_store %arg4[%c0_8, %c0_9], %15 {strides = array<i32>} : memref<8x128xf32, #tpu.memory_space<vmem>>, vector<8x128xf32>,
    return
  }
  func.func @transform_0(%arg0: i32) -> (i32, i32) {
    %c0_i32 = arith.constant 0 : i32
    %c0_i32_0 = arith.constant 0 : i32
    return %arg0, %c0_i32 : i32, i32
  }
  func.func @transform_1(%arg0: i32) -> (i32, i32) {
    %c0_i32 = arith.constant 0 : i32
    %c0_i32_0 = arith.constant 0 : i32
    %c0_i32_1 = arith.constant 0 : i32
    return %c0_i32, %c0_i32_0 : i32, i32
  }
  func.func @transform_2(%arg0: i32) -> (i32, i32) {
    %c0_i32 = arith.constant 0 : i32
    %c0_i32_0 = arith.constant 0 : i32
    %c0_i32_1 = arith.constant 0 : i32
    return %c0_i32, %c0_i32_0 : i32, i32
  }
  func.func @transform_3(%arg0: i32) -> (i32, i32) {
    %c0_i32 = arith.constant 0 : i32
    %c0_i32_0 = arith.constant 0 : i32
    return %arg0, %c0_i32 : i32, i32
  }
}

</mosaic_0001>

<bundles_post_ra>
// kernel: linear_embedder_forward.1
= control target key start
LH: loop header
LB: loop body
LE: loop exit
PB: predicated region body
PF: predicated region fallthrough
CT: control target
= control target key end

     0   :  { %s390_s0 = inlined_call_operand.vmem [shape: f32[8,256], index: 0, kind: input, shape index: {}]   ;;  %s391_s1 = inlined_call_operand.vmem [shape: f32[256,128], index: 1, kind: input, shape index: {}]   ;;  %s392_s2 = inlined_call_operand.vmem [shape: f32[1,128], index: 2, kind: input, shape index: {}]   ;;  %s393_s3 = inlined_call_operand.hbm [shape: f32[8,128], index: 3, kind: output, shape index: {}]  }
   0x1   :  { %v33_v0 = vld [vmem:[%s391_s1 + $0x80] sm:$0xff]  ;;  %v34_v1 = vld [vmem:[%s391_s1 + $0x88] sm:$0xff]  ;;  %v35_v5 = vld [vmem:[%s391_s1 + $0x90] sm:$0xff] }
   0x2   :  { %v17_v2 = vld [vmem:[%s391_s1] sm:$0xff]  ;;  %v191_v3 = vpack.c.bf16 %v34_v1, %v33_v0  ;;  %v18_v4 = vld [vmem:[%s391_s1 + $0x8] sm:$0xff]  ;;  %v36_v6 = vld [vmem:[%s391_s1 + $0x98] sm:$0xff] }
   0x3   :  { %v193_v7 = vpack.c.bf16 %v18_v4, %v17_v2  ;;  %v195_v8 = vpack.c.bf16 %v36_v6, %v35_v5  ;;  %v19_v9 = vld [vmem:[%s391_s1 + $0x10] sm:$0xff]  ;;  %v20_v10 = vld [vmem:[%s391_s1 + $0x18] sm:$0xff]  ;;  %v37_v11 = vld [vmem:[%s391_s1 + $0xa0] sm:$0xff] }
   0x4   :  { %192 = vmatprep.subr.bf16.mxu0 %v191_v3  ;;  %v38_v12 = vld [vmem:[%s391_s1 + $0xa8] sm:$0xff]  ;;  %v197_v13 = vpack.c.bf16 %v20_v10, %v19_v9  ;;  %v21_v15 = vld [vmem:[%s391_s1 + $0x20] sm:$0xff]  ;;  %v39_v17 = vld [vmem:[%s391_s1 + $0xb0] sm:$0xff] }
   0x5   :  { %194 = vmatpush3.bf16.msra.mxu0 %v193_v7  ;;  %v199_v14 = vpack.c.bf16 %v38_v12, %v37_v11  ;;  %v22_v16 = vld [vmem:[%s391_s1 + $0x28] sm:$0xff]  ;;  %v40_v18 = vld [vmem:[%s391_s1 + $0xb8] sm:$0xff]  ;;  %v23_v21 = vld [vmem:[%s391_s1 + $0x30] sm:$0xff] }
   0x6   :  { %196 = vmatprep.subr.bf16.mxu0 %v195_v8  ;;  %v201_v19 = vpack.c.bf16 %v22_v16, %v21_v15  ;;  %v203_v20 = vpack.c.bf16 %v40_v18, %v39_v17  ;;  %v24_v22 = vld [vmem:[%s391_s1 + $0x38] sm:$0xff]  ;;  %v41_v23 = vld [vmem:[%s391_s1 + $0xc0] sm:$0xff]  ;;  %v42_v24 = vld [vmem:[%s391_s1 + $0xc8] sm:$0xff] }
   0x7   :  { %v16_v25 = vld [vmem:[%s390_s0 + $0x8] sm:$0xff] }
   0x8   :  { %120 = vmatprep.mubr.f32.mxu0 %v16_v25 }
   0x9   :  { %198 = vmatpush3.bf16.msra.mxu0 %v197_v13 }
   0xa   :  { %200 = vmatprep.subr.bf16.mxu0 %v199_v14 }
   0xb   :  { %8 = vsyncpa [#allocation3], 0  ;;  %v205_v26 = vpack.c.bf16 %v24_v22, %v23_v21  ;;  %v207_v27 = vpack.c.bf16 %v42_v24, %v41_v23  ;;  %v25_v28 = vld [vmem:[%s391_s1 + $0x40] sm:$0xff]  ;;  %v26_v29 = vld [vmem:[%s391_s1 + $0x48] sm:$0xff] }
   0xc   :  { %v43_v30 = vld [vmem:[%s391_s1 + $0xd0] sm:$0xff]  ;;  %v44_v31 = vld [vmem:[%s391_s1 + $0xd8] sm:$0xff]  ;;  %v209_v32 = vpack.c.bf16 %v26_v29, %v25_v28  ;;  %v45_v36 = vld [vmem:[%s391_s1 + $0xe0] sm:$0xff] }
   0xd   :  { %202 = vmatpush3.bf16.msra.mxu0 %v201_v19  ;;  %v211_v33 = vpack.c.bf16 %v44_v31, %v43_v30  ;;  %v27_v34 = vld [vmem:[%s391_s1 + $0x50] sm:$0xff]  ;;  %v28_v35 = vld [vmem:[%s391_s1 + $0x58] sm:$0xff]  ;;  %v46_v37 = vld [vmem:[%s391_s1 + $0xe8] sm:$0xff] }
   0xe   :  { %204 = vmatprep.subr.bf16.mxu0 %v203_v20  ;;  %v213_v38 = vpack.c.bf16 %v28_v35, %v27_v34  ;;  %v215_v39 = vpack.c.bf16 %v46_v37, %v45_v36  ;;  %v29_v40 = vld [vmem:[%s391_s1 + $0x60] sm:$0xff]  ;;  %v30_v41 = vld [vmem:[%s391_s1 + $0x68] sm:$0xff]  ;;  %v47_v42 = vld [vmem:[%s391_s1 + $0xf0] sm:$0xff] }
   0xf   :  { %v48_v43 = vld [vmem:[%s391_s1 + $0xf8] sm:$0xff]  ;;  %v217_v44 = vpack.c.bf16 %v30_v41, %v29_v40  ;;  %v31_v46 = vld [vmem:[%s391_s1 + $0x70] sm:$0xff]  ;;  %v15_v49 = vld [vmem:[%s390_s0] sm:$0xff]  ;;  %s252_s0 = smov [#allocation2]  }
  0x10   :  { %v219_v45 = vpack.c.bf16 %v48_v43, %v47_v42  ;;  %v32_v47 = vld [vmem:[%s391_s1 + $0x78] sm:$0xff]  ;;  %v155_v52 = vld [vmem:[%s392_s2] ss:$0 sm:$0xff]  ;;  %s147_s1 = sshll.u32 %s252_s0, 4  ;;  %s148_s1 = int_to_ptr.vmem [resolvable:$true] %s147_s1 }
  0x11   :  { %206 = vmatpush3.bf16.msra.mxu0 %v205_v26  ;;  %v221_v48 = vpack.c.bf16 %v32_v47, %v31_v46  ;;  %s228_s2 = scalar_lea.vmem %s148_s1, 128  ;;  %p233_p1 = scmp.lt.s32.totalorder %s148_s1, %s148_s1 }
  0x12   :  { %208 = vmatprep.subr.bf16.mxu0 %v207_v27  ;;  %p229_p0 = scmp.ne.s32.totalorder %s148_s1, %s228_s2  ;;  %p234_p2 = scmp.lt.s32.totalorder %s228_s2, %s228_s2 }
  0x14   :  { %p235_p3 = por %p234_p2, %p233_p1 }
  0x15   :  { %210 = vmatpush3.bf16.msra.mxu0 %v209_v32 }
  0x16   :  { %212 = vmatprep.subr.bf16.mxu0 %v211_v33  ;;  %p236_p4 = pnand %p235_p3, %p229_p0 }
  0x19   :  { %214 = vmatpush3.bf16.msra.mxu0 %v213_v38 }
  0x1a   :  { %216 = vmatprep.subr.bf16.mxu0 %v215_v39 }
  0x1d   :  { %218 = vmatpush3.bf16.msra.mxu0 %v217_v44 }
  0x1e   :  { %220 = vmatprep.subr.bf16.mxu0 %v219_v45 }
  0x21   :  { %222 = vmatpush3.bf16.msra.mxu0 %v221_v48 }
  0x24   :  { %121 = vmatmul.mubr.f32.vlgmr.msra.gmra.mrb[0].mxu0 %v15_v49 }
  0xf7   :  { %v188_v50 = vpop.f32.mrb[0].mxu0 }
  0xf8   :  { %v189_v51 = vpop.f32.mrb[1].mxu0 }
  0xf9   :  { %v190_v53 = vadd.f32 %v189_v51, %v188_v50 }
  0xfb   :  { %v123_v54 = vadd.f32 %v190_v53, %v155_v52 }
  0xfd   :  { %v126_v55 = vmul.f32 %v123_v54, %v123_v54 }
  0xff   :  { %127 = vadd.xlane.f32.xlu0 %v126_v55 }
 0x18c   :  { %v128_v56 = vpop.xlane.xlu0 %127 }
 0x18d   :  { %224 = vrsqrt.f32 %v128_v56  ;;  %vm131_vm0 = vcmp.eq.f32.partialorder %v128_v56, inf  ;;  %v134_v59 = vand.u32 2147483648, %v128_v56  ;;  %vm133_vm1 = vcmp.eq.f32.partialorder %v128_v56, 0.0 }
 0x197   :  { %v225_v57 = vpop.eup %224 }
 0x198   :  { %v130_v58 = vmul.f32 %v225_v57, %v128_v56 }
 0x19a   :  { %v132_v60 = vsel %vm131_vm0, %v128_v56, %v130_v58 }
 0x19b   :  { %v135_v61 = vsel %vm133_vm1, %v134_v59, %v132_v60 }
 0x19c   :  { %v136_v62 = vmax.f32 %v135_v61, 1e-12 }
 0x19e   :  { %226 = vrcp.f32 %v136_v62 }
 0x1a8   :  { %v227_v63 = vpop.eup %226 }
 0x1a9   :  { %v139_v0 = vmul.f32 %v227_v63, %v123_v54 }
 0x1ab   :  { %140 = vst [vmem:[#allocation2] sm:$0xff] %v139_v0 }
 0x1ac   :  { %239 = shalt.err (!%p236_p4)
}
 0x1ad   :  { %s240_s30 = scalar_lea.hbm %s393_s3, 128 }
 0x1ae   :  { %p241_p5 = scmp.ne.s32.totalorder %s393_s3, %s240_s30  ;;  %p244_p6 = scmp.lt.u32.totalorder %s240_s30, %s393_s3 }
 0x1b0   :  { %p246_p7 = pnand %p244_p6, %p241_p5 }
 0x1b2   :  { %249 = shalt.err (!%p246_p7)
}
 0x1b3   :  { %150 = dma.vmem_to_hbm [thread:$0]  %s148_s1, 128, %s393_s3, [#allocation3]  }
 0x1b4   :  { %250 = dma.done.wait [#allocation3], 128  }
 0x1b5   :  { %251 = vsyncadd [#allocation3], 4294967168 }
 0x1b6   :  { %154 = vsyncpa [#allocation3], 1 }

</bundles_post_ra>
